<compile_context>
chip_gen: v7x
topology: tpu7x:2x2x1
jax: 0.10.0
libtpu: 0.0.40
codegen_flags: <defaults>
</compile_context>

<pallas_src>
import functools

import jax
import jax.numpy as jnp
from jax.experimental import pallas as pl
from jax.experimental.pallas import tpu as pltpu

_LANES = 512          # lane-dense last dim (multiple of 128)
_MAX_TILE_M = 1024    # rows per block -> 1024 * 512 * 4 B = 2 MiB per f32 tile


def _round_up(v, m):
    return ((v + m - 1) // m) * m


def _srl(v, k):
    """Logical right shift on int32 (arithmetic shift + mask of the high bits)."""
    return (v >> k) & jnp.int32((1 << (32 - k)) - 1)


def _gaussian_noise_kernel(seed_ref, x_ref, o_ref, *, stddev):
    tile_m, lanes = x_ref.shape
    pid = pl.program_id(0)

    # Unique per-element counter: global linear index into the padded slab
    # (includes program_id, so tiles / cores never repeat noise).
    row = jax.lax.broadcasted_iota(jnp.int32, (tile_m, lanes), 0)
    col = jax.lax.broadcasted_iota(jnp.int32, (tile_m, lanes), 1)
    idx = (pid * tile_m + row) * lanes + col

    # Counter-based hash (murmur3-fmix32 flavour), salted with the SMEM seed.
    seed = seed_ref[0]
    h = idx ^ (seed * jnp.int32(-1640531527))        # 0x9E3779B9
    h = h * jnp.int32(-2048144789)                   # 0x85EBCA6B
    h = h ^ _srl(h, 13)
    h = h * jnp.int32(-1028477387)                   # 0xC2B2AE35
    h = h ^ _srl(h, 16)
    h = h * jnp.int32(-2048144789)                   # extra round for low-bit mixing
    h = h ^ _srl(h, 16)

    # Uniform in (0, 1) from the top 24 bits (never exactly 0 or 1).
    r24 = _srl(h, 8).astype(jnp.float32)
    u = (r24 + jnp.float32(0.5)) * jnp.float32(1.0 / (1 << 24))

    # Standard normal via inverse-CDF rational approximation (A&S 26.2.23):
    # VPU polynomials + one log + one sqrt; |err| < 4.5e-4 — plenty for noise.
    p = jnp.minimum(u, jnp.float32(1.0) - u)
    t = jnp.sqrt(jnp.float32(-2.0) * jnp.log(p))
    num = jnp.float32(2.515517) + t * (jnp.float32(0.802853)
                                       + t * jnp.float32(0.010328))
    den = jnp.float32(1.0) + t * (jnp.float32(1.432788)
                                  + t * (jnp.float32(0.189269)
                                         + t * jnp.float32(0.001308)))
    z = t - num / den
    z = jnp.where(u < jnp.float32(0.5), -z, z)

    o_ref[...] = (x_ref[...].astype(jnp.float32)
                  + z * jnp.float32(stddev)).astype(o_ref.dtype)


def gaussian_noise(x, seed, stddev, training=True):
    """Pallas implementation of GaussianNoise.forward.

    x: float array of any shape (e.g. NCHW conv activations)
    seed: int32 scalar seeding the in-kernel counter hash
    stddev: python float, noise standard deviation
    training: static bool — matches nn.Module.training
    """
    if not training:
        return x  # eval fast path: identity, no kernel launch / HBM traffic

    orig_shape = x.shape
    orig_dtype = x.dtype
    total = x.size

    # Lane-dense slab: flatten, pad to a multiple of (tile_m * _LANES), reshape.
    m_needed = pl.cdiv(total, _LANES)
    tile_m = min(_MAX_TILE_M, _round_up(m_needed, 8))   # >= 8 sublanes, <= 2 MiB
    m = _round_up(m_needed, tile_m)
    padded_total = m * _LANES

    flat = x.reshape(-1)
    if padded_total != total:
        flat = jnp.pad(flat, (0, padded_total - total))
    x2 = flat.reshape(m, _LANES)

    kernel = functools.partial(_gaussian_noise_kernel, stddev=float(stddev))

    out2 = pl.pallas_call(
        kernel,
        out_shape=jax.ShapeDtypeStruct((m, _LANES), orig_dtype),
        grid_spec=pltpu.PrefetchScalarGridSpec(
            num_scalar_prefetch=1,                      # seed lands in SMEM
            grid=(m // tile_m,),
            in_specs=[pl.BlockSpec((tile_m, _LANES), lambda i, seed_ref: (i, 0))],
            out_specs=pl.BlockSpec((tile_m, _LANES), lambda i, seed_ref: (i, 0)),
        ),
        compiler_params=pltpu.CompilerParams(
            dimension_semantics=("parallel",)),          # v7x: shard rows over 2 TCs
        cost_estimate=pl.CostEstimate(
            flops=30 * padded_total,
            transcendentals=2 * padded_total,
            bytes_accessed=2 * padded_total * jnp.dtype(orig_dtype).itemsize),
    )(jnp.asarray([seed], dtype=jnp.int32), x2)

    out_flat = out2.reshape(-1)
    if padded_total != total:
        out_flat = out_flat[:total]
    return out_flat.reshape(orig_shape)


if __name__ == "__main__":
    key = jax.random.PRNGKey(0)
    x = jax.random.normal(key, (2, 4, 16, 16), dtype=jnp.float32)
    stddev = 0.1

    # Training mode: x + N(0,1) * stddev
    y_train = jax.block_until_ready(
        gaussian_noise(x, seed=1234, stddev=stddev, training=True))
    assert y_train.shape == x.shape and y_train.dtype == x.dtype
    noise = y_train - x
    assert bool(jnp.all(jnp.isfinite(noise)))
    assert float(jnp.abs(noise).max()) > 0.0
    nstd = float(jnp.std(noise))
    nmean = float(jnp.mean(noise))
    assert 0.05 < nstd < 0.2, nstd
    assert abs(nmean) < 0.05, nmean

    # Different seeds -> different noise
    y_train2 = jax.block_until_ready(
        gaussian_noise(x, seed=999, stddev=stddev, training=True))
    assert float(jnp.abs(y_train2 - y_train).max()) > 0.0

    # Eval mode: exact identity (no kernel launch)
    y_eval = jax.block_until_ready(
        gaussian_noise(x, seed=1234, stddev=stddev, training=False))
    assert bool(jnp.array_equal(y_eval, x))

    # Non-128-divisible spatial dims (e.g. 7x7 feature maps) exercise padding.
    x_small = jax.random.normal(jax.random.PRNGKey(1), (2, 3, 7, 7), jnp.float32)
    y_small = jax.block_until_ready(
        gaussian_noise(x_small, seed=7, stddev=stddev, training=True))
    assert y_small.shape == x_small.shape and y_small.dtype == x_small.dtype
    assert bool(jnp.all(jnp.isfinite(y_small)))
    assert float(jnp.abs(y_small - x_small).max()) > 0.0

    print("KERNEL_OK")
</pallas_src>

<mosaic_0001>
module attributes {stable_mosaic.version = 11 : i64} {
  func.func @_gaussian_noise_kernel(%arg0: i32, %arg1: memref<1xi32, #tpu.memory_space<smem>>, %arg2: memref<8x512xf32, #tpu.memory_space<vmem>>, %arg3: memref<8x512xf32, #tpu.memory_space<vmem>>) attributes {dimension_semantics = [#tpu.dimension_semantics<parallel>], iteration_bounds = array<i64: 1>, scalar_prefetch = 1 : i64, scratch_operands = 0 : i64, tpu.core_type = #tpu.core_type<tc>, window_params = [{transform_indices = @transform_0, window_bounds = array<i64: 8, 512>}, {transform_indices = @transform_1, window_bounds = array<i64: 8, 512>}]} {
    %0 = tpu.iota {dimensions = array<i32: 0>} : vector<8x512xi32>
    %1 = tpu.iota {dimensions = array<i32: 1>} : vector<8x512xi32>
    %c8_i32 = arith.constant 8 : i32
    %2 = arith.muli %arg0, %c8_i32 : i32
    %3 = vector.broadcast %2 : i32 to vector<8x512xi32>
    %4 = arith.addi %3, %0 : vector<8x512xi32>
    %c512_i32 = arith.constant 512 : i32
    %5 = vector.broadcast %c512_i32 : i32 to vector<8x512xi32>
    %6 = arith.muli %4, %5 : vector<8x512xi32>
    %7 = arith.addi %6, %1 : vector<8x512xi32>
    %c0 = arith.constant 0 : index
    %8 = memref.load %arg1[%c0] : memref<1xi32, #tpu.memory_space<smem>>
    %c-1640531527_i32 = arith.constant -1640531527 : i32
    %9 = arith.muli %8, %c-1640531527_i32 : i32
    %10 = vector.broadcast %9 : i32 to vector<8x512xi32>
    %11 = arith.xori %7, %10 : vector<8x512xi32>
    %c-2048144789_i32 = arith.constant -2048144789 : i32
    %12 = vector.broadcast %c-2048144789_i32 : i32 to vector<8x512xi32>
    %13 = arith.muli %11, %12 : vector<8x512xi32>
    %c13_i32 = arith.constant 13 : i32
    %14 = vector.broadcast %c13_i32 : i32 to vector<8x512xi32>
    %15 = arith.shrsi %13, %14 : vector<8x512xi32>
    %c524287_i32 = arith.constant 524287 : i32
    %16 = vector.broadcast %c524287_i32 : i32 to vector<8x512xi32>
    %17 = arith.andi %15, %16 : vector<8x512xi32>
    %18 = arith.xori %13, %17 : vector<8x512xi32>
    %c-1028477387_i32 = arith.constant -1028477387 : i32
    %19 = vector.broadcast %c-1028477387_i32 : i32 to vector<8x512xi32>
    %20 = arith.muli %18, %19 : vector<8x512xi32>
    %c16_i32 = arith.constant 16 : i32
    %21 = vector.broadcast %c16_i32 : i32 to vector<8x512xi32>
    %22 = arith.shrsi %20, %21 : vector<8x512xi32>
    %c65535_i32 = arith.constant 65535 : i32
    %23 = vector.broadcast %c65535_i32 : i32 to vector<8x512xi32>
    %24 = arith.andi %22, %23 : vector<8x512xi32>
    %25 = arith.xori %20, %24 : vector<8x512xi32>
    %c-2048144789_i32_0 = arith.constant -2048144789 : i32
    %26 = vector.broadcast %c-2048144789_i32_0 : i32 to vector<8x512xi32>
    %27 = arith.muli %25, %26 : vector<8x512xi32>
    %c16_i32_1 = arith.constant 16 : i32
    %28 = vector.broadcast %c16_i32_1 : i32 to vector<8x512xi32>
    %29 = arith.shrsi %27, %28 : vector<8x512xi32>
    %c65535_i32_2 = arith.constant 65535 : i32
    %30 = vector.broadcast %c65535_i32_2 : i32 to vector<8x512xi32>
    %31 = arith.andi %29, %30 : vector<8x512xi32>
    %32 = arith.xori %27, %31 : vector<8x512xi32>
    %c8_i32_3 = arith.constant 8 : i32
    %33 = vector.broadcast %c8_i32_3 : i32 to vector<8x512xi32>
    %34 = arith.shrsi %32, %33 : vector<8x512xi32>
    %c16777215_i32 = arith.constant 16777215 : i32
    %35 = vector.broadcast %c16777215_i32 : i32 to vector<8x512xi32>
    %36 = arith.andi %34, %35 : vector<8x512xi32>
    %37 = arith.sitofp %36 : vector<8x512xi32> to vector<8x512xf32>
    %cst = arith.constant 5.000000e-01 : f32
    %38 = vector.broadcast %cst : f32 to vector<8x512xf32>
    %39 = arith.addf %37, %38 : vector<8x512xf32>
    %cst_4 = arith.constant 5.96046448E-8 : f32
    %40 = vector.broadcast %cst_4 : f32 to vector<8x512xf32>
    %41 = arith.mulf %39, %40 : vector<8x512xf32>
    %cst_5 = arith.constant 1.000000e+00 : f32
    %42 = vector.broadcast %cst_5 : f32 to vector<8x512xf32>
    %43 = arith.subf %42, %41 : vector<8x512xf32>
    %44 = arith.minimumf %41, %43 : vector<8x512xf32>
    %45 = math.log %44 : vector<8x512xf32>
    %cst_6 = arith.constant -2.000000e+00 : f32
    %46 = vector.broadcast %cst_6 : f32 to vector<8x512xf32>
    %47 = arith.mulf %46, %45 : vector<8x512xf32>
    %48 = math.sqrt %47 : vector<8x512xf32>
    %cst_7 = arith.constant 1.032800e-02 : f32
    %49 = vector.broadcast %cst_7 : f32 to vector<8x512xf32>
    %50 = arith.mulf %48, %49 : vector<8x512xf32>
    %cst_8 = arith.constant 0.802852988 : f32
    %51 = vector.broadcast %cst_8 : f32 to vector<8x512xf32>
    %52 = arith.addf %51, %50 : vector<8x512xf32>
    %53 = arith.mulf %48, %52 : vector<8x512xf32>
    %cst_9 = arith.constant 2.515517 : f32
    %54 = vector.broadcast %cst_9 : f32 to vector<8x512xf32>
    %55 = arith.addf %54, %53 : vector<8x512xf32>
    %cst_10 = arith.constant 1.308000e-03 : f32
    %56 = vector.broadcast %cst_10 : f32 to vector<8x512xf32>
    %57 = arith.mulf %48, %56 : vector<8x512xf32>
    %cst_11 = arith.constant 1.892690e-01 : f32
    %58 = vector.broadcast %cst_11 : f32 to vector<8x512xf32>
    %59 = arith.addf %58, %57 : vector<8x512xf32>
    %60 = arith.mulf %48, %59 : vector<8x512xf32>
    %cst_12 = arith.constant 1.43278801 : f32
    %61 = vector.broadcast %cst_12 : f32 to vector<8x512xf32>
    %62 = arith.addf %61, %60 : vector<8x512xf32>
    %63 = arith.mulf %48, %62 : vector<8x512xf32>
    %cst_13 = arith.constant 1.000000e+00 : f32
    %64 = vector.broadcast %cst_13 : f32 to vector<8x512xf32>
    %65 = arith.addf %64, %63 : vector<8x512xf32>
    %66 = arith.divf %55, %65 : vector<8x512xf32>
    %67 = arith.subf %48, %66 : vector<8x512xf32>
    %cst_14 = arith.constant 5.000000e-01 : f32
    %68 = vector.broadcast %cst_14 : f32 to vector<8x512xf32>
    %69 = arith.cmpf olt, %41, %68 : vector<8x512xf32>
    %cst_15 = arith.constant 0.000000e+00 : f32
    %70 = vector.broadcast %cst_15 : f32 to vector<8x512xf32>
    %71 = arith.subf %70, %67 : vector<8x512xf32>
    %72 = arith.select %69, %71, %67 : vector<8x512xi1>, vector<8x512xf32>
    %c0_16 = arith.constant 0 : index
    %c0_17 = arith.constant 0 : index
    %73 = vector.load %arg2[%c0_16, %c0_17] : memref<8x512xf32, #tpu.memory_space<vmem>>, vector<8x512xf32>
    %cst_18 = arith.constant 1.000000e-01 : f32
    %74 = vector.broadcast %cst_18 : f32 to vector<8x512xf32>
    %75 = arith.mulf %72, %74 : vector<8x512xf32>
    %76 = arith.addf %73, %75 : vector<8x512xf32>
    %c0_19 = arith.constant 0 : index
    %c0_20 = arith.constant 0 : index
    %77 = vector.load %arg3[%c0_19, %c0_20] : memref<8x512xf32, #tpu.memory_space<vmem>>, vector<8x512xf32>
    tpu.vector_store %arg3[%c0_19, %c0_20], %76 {strides = array<i32>} : memref<8x512xf32, #tpu.memory_space<vmem>>, vector<8x512xf32>,
    return
  }
  func.func @transform_0(%arg0: i32, %arg1: memref<1xi32, #tpu.memory_space<smem>>) -> (i32, i32) {
    %c0_i32 = arith.constant 0 : i32
    %c0_i32_0 = arith.constant 0 : i32
    return %arg0, %c0_i32 : i32, i32
  }
  func.func @transform_1(%arg0: i32, %arg1: memref<1xi32, #tpu.memory_space<smem>>) -> (i32, i32) {
    %c0_i32 = arith.constant 0 : i32
    %c0_i32_0 = arith.constant 0 : i32
    return %arg0, %c0_i32 : i32, i32
  }
}

</mosaic_0001>

<bundles_post_ra>
// kernel: tpu_custom_call.1
= control target key start
LH: loop header
LB: loop body
LE: loop exit
PB: predicated region body
PF: predicated region fallthrough
CT: control target
= control target key end

     0   :  { %8 = vsyncpa [#allocation5], 0  ;;  %s418_s0 = inlined_call_operand.<no memory space> [shape: s32[1], index: 0, kind: input, shape index: {}]   ;;  %s419_s1 = inlined_call_operand.hbm [shape: f32[8,512], index: 1, kind: input, shape index: {}]   ;;  %s420_s2 = inlined_call_operand.hbm [shape: f32[8,512], index: 2, kind: output, shape index: {}]  }
   0x1   :  { %9 = vsyncpa [#allocation6], 0  ;;  %s346_s9 = smov [#allocation4]   ;;  %s298_s13 = scalar_lea.hbm %s419_s1, 512 }
   0x2   :  { %s16_s10 = sshll.u32 %s346_s9, 4  ;;  %p299_p0 = scmp.ne.s32.totalorder %s419_s1, %s298_s13  ;;  %s17_s10 = int_to_ptr.vmem [resolvable:$true] %s16_s10 }
   0x3   :  { %p302_p1 = scmp.lt.u32.totalorder %s298_s13, %s419_s1 }
   0x5   :  { %p304_p2 = pnand %p302_p1, %p299_p0 }
   0x7   :  { %307 = shalt.err (!%p304_p2)
}
   0x8   :  { %s308_s18 = scalar_lea.vmem %s17_s10, 512  ;;  %p313_p4 = scmp.lt.s32.totalorder %s17_s10, %s17_s10 }
   0x9   :  { %p309_p3 = scmp.ne.s32.totalorder %s17_s10, %s308_s18  ;;  %p314_p5 = scmp.lt.s32.totalorder %s308_s18, %s308_s18 }
   0xb   :  { %p315_p6 = por %p314_p5, %p313_p4 }
   0xd   :  { %p316_p7 = pnand %p315_p6, %p309_p3 }
   0xf   :  { %319 = shalt.err (!%p316_p7)
}
  0x10   :  { %19 = dma.hbm_to_vmem [thread:$0]  %s419_s1, 512, %s17_s10, [#allocation5]  }
  0x11   :  { %342 = dma.done.wait [#allocation5], 512  }
  0x12   :  { %343 = vsyncadd [#allocation5], 4294966784  ;;  %v23_v0 = vlaneseq  ;;  %s39_s23 = smul.u32 2654435769, %s418_s0  ;;  %s347_s0 = smov [#allocation7]  }
  0x13   :  { %s247_s1 = sshll.u32 %s347_s0, 4  ;;  %s248_s1 = int_to_ptr.vmem [resolvable:$true] %s247_s1 }
  0x14   :  { %v24_v1 = vshrl.u32 %v23_v0, 7  ;;  %v26_v2 = vand.u32 127, %v23_v0  ;;  %v40_v7 = vstv %s39_s23  ;;  %s320_s24 = scalar_lea.vmem %s248_s1, 512  ;;  %p325_p9 = scmp.lt.s32.totalorder %s248_s1, %s248_s1 }
  0x15   :  { %p321_p8 = scmp.ne.s32.totalorder %s248_s1, %s320_s24  ;;  %p326_p10 = scmp.lt.s32.totalorder %s320_s24, %s320_s24 }
  0x16   :  { %v33_v3 = vmul.u32 512, %v24_v1  ;;  %v27_v4 = vadd.s32 128, %v26_v2  ;;  %v28_v5 = vadd.s32 256, %v26_v2  ;;  %v29_v6 = vadd.s32 384, %v26_v2 }
  0x17   :  { %p327_p11 = por %p326_p10, %p325_p9 }
  0x18   :  { %v34_v8 = vadd.s32 %v33_v3, %v26_v2  ;;  %v35_v9 = vadd.s32 %v33_v3, %v27_v4  ;;  %v36_v10 = vadd.s32 %v33_v3, %v28_v5  ;;  %v37_v11 = vadd.s32 %v33_v3, %v29_v6 }
  0x19   :  { %p328_p12 = pnand %p327_p11, %p321_p8 }
  0x1a   :  { %v41_v12 = vxor.u32 %v40_v7, %v34_v8  ;;  %v42_v13 = vxor.u32 %v40_v7, %v35_v9  ;;  %v43_v14 = vxor.u32 %v40_v7, %v36_v10  ;;  %v44_v15 = vxor.u32 %v40_v7, %v37_v11 }
  0x1c   :  { %v45_v16 = vmul.u32 2246822507, %v41_v12  ;;  %v46_v17 = vmul.u32 2246822507, %v42_v13 }
  0x1d   :  { %v47_v18 = vmul.u32 2246822507, %v43_v14  ;;  %v48_v19 = vmul.u32 2246822507, %v44_v15 }
  0x1e   :  { %v256_v20 = vshrl.u32 %v45_v16, 13  ;;  %v257_v21 = vshrl.u32 %v46_v17, 13 }
  0x1f   :  { %v258_v22 = vshrl.u32 %v47_v18, 13  ;;  %v259_v23 = vshrl.u32 %v48_v19, 13 }
  0x20   :  { %v57_v24 = vxor.u32 %v256_v20, %v45_v16  ;;  %v58_v25 = vxor.u32 %v257_v21, %v46_v17 }
  0x21   :  { %v59_v26 = vxor.u32 %v258_v22, %v47_v18  ;;  %v60_v27 = vxor.u32 %v259_v23, %v48_v19 }
  0x22   :  { %v61_v28 = vmul.u32 3266489909, %v57_v24  ;;  %v62_v29 = vmul.u32 3266489909, %v58_v25 }
  0x23   :  { %v63_v30 = vmul.u32 3266489909, %v59_v26  ;;  %v64_v31 = vmul.u32 3266489909, %v60_v27 }
  0x24   :  { %v260_v32 = vshrl.u32 %v61_v28, 16  ;;  %v261_v33 = vshrl.u32 %v62_v29, 16 }
  0x25   :  { %v262_v34 = vshrl.u32 %v63_v30, 16  ;;  %v263_v35 = vshrl.u32 %v64_v31, 16 }
  0x26   :  { %v73_v36 = vxor.u32 %v260_v32, %v61_v28  ;;  %v74_v37 = vxor.u32 %v261_v33, %v62_v29 }
  0x27   :  { %v75_v38 = vxor.u32 %v262_v34, %v63_v30  ;;  %v76_v39 = vxor.u32 %v263_v35, %v64_v31 }
  0x28   :  { %v77_v40 = vmul.u32 2246822507, %v73_v36  ;;  %v78_v41 = vmul.u32 2246822507, %v74_v37 }
  0x29   :  { %v79_v42 = vmul.u32 2246822507, %v75_v38  ;;  %v80_v43 = vmul.u32 2246822507, %v76_v39 }
  0x2a   :  { %v264_v44 = vshrl.u32 %v77_v40, 16  ;;  %v265_v45 = vshrl.u32 %v78_v41, 16 }
  0x2b   :  { %v266_v46 = vshrl.u32 %v79_v42, 16  ;;  %v267_v47 = vshrl.u32 %v80_v43, 16 }
  0x2c   :  { %v89_v48 = vxor.u32 %v264_v44, %v77_v40  ;;  %v90_v49 = vxor.u32 %v265_v45, %v78_v41 }
  0x2d   :  { %v91_v50 = vxor.u32 %v266_v46, %v79_v42  ;;  %v92_v51 = vxor.u32 %v267_v47, %v80_v43 }
  0x2e   :  { %v268_v52 = vshrl.u32 %v89_v48, 8  ;;  %v269_v53 = vshrl.u32 %v90_v49, 8 }
  0x2f   :  { %v270_v54 = vshrl.u32 %v91_v50, 8  ;;  %v271_v55 = vshrl.u32 %v92_v51, 8 }
  0x30   :  { %v101_v56 = vcvt.s32.f32 %v268_v52  ;;  %v102_v57 = vcvt.s32.f32 %v269_v53 }
  0x31   :  { %v103_v58 = vcvt.s32.f32 %v270_v54  ;;  %v104_v59 = vcvt.s32.f32 %v271_v55 }
  0x32   :  { %v105_v60 = vadd.f32 0.5, %v101_v56  ;;  %v106_v61 = vadd.f32 0.5, %v102_v57 }
  0x33   :  { %v107_v62 = vadd.f32 0.5, %v103_v58  ;;  %v108_v63 = vadd.f32 0.5, %v104_v59 }
  0x34   :  { %v378_v0 = vmul.f32 5.9604645e-08, %v105_v60  ;;  %v380_v1 = vmul.f32 5.9604645e-08, %v106_v61 }
  0x35   :  { %v382_v2 = vmul.f32 5.9604645e-08, %v107_v62  ;;  %v384_v3 = vmul.f32 5.9604645e-08, %v108_v63 }
  0x36   :  { %v113_v4 = vsub.f32 1.0, %v378_v0  ;;  %v114_v5 = vsub.f32 1.0, %v380_v1  ;;  %vm213_vm8 = vcmp.lt.f32.partialorder %v378_v0, 0.5  ;;  %vm214_vm9 = vcmp.lt.f32.partialorder %v380_v1, 0.5 }
  0x37   :  { %v115_v6 = vsub.f32 1.0, %v382_v2  ;;  %v116_v7 = vsub.f32 1.0, %v384_v3  ;;  %vm215_vm10 = vcmp.lt.f32.partialorder %v382_v2, 0.5  ;;  %vm216_vm11 = vcmp.lt.f32.partialorder %v384_v3, 0.5 }
  0x38   :  { %v117_v8 = vmin.f32 %v378_v0, %v113_v4  ;;  %v118_v9 = vmin.f32 %v380_v1, %v114_v5  ;;  %v227_v1 = vld [vmem:[#allocation4 + $0x10] sm:$0xff] }
  0x39   :  { %v119_v10 = vmin.f32 %v382_v2, %v115_v6  ;;  %v120_v11 = vmin.f32 %v384_v3, %v116_v7 }
  0x3a   :  { %274 = vlog2.f32 %v117_v8 }
  0x3b   :  { %276 = vlog2.f32 %v118_v9 }
  0x3c   :  { %278 = vlog2.f32 %v119_v10 }
  0x3d   :  { %280 = vlog2.f32 %v120_v11 }
  0x44   :  { %v275_v12 = vpop.eup %274 }
  0x45   :  { %v277_v13 = vpop.eup %276  ;;  %v122_v14 = vmul.f32 0.6931472, %v275_v12 }
  0x46   :  { %v279_v15 = vpop.eup %278  ;;  %v124_v16 = vmul.f32 0.6931472, %v277_v13 }
  0x47   :  { %v281_v17 = vpop.eup %280  ;;  %v129_v18 = vmul.f32 -2.0, %v122_v14  ;;  %v126_v19 = vmul.f32 0.6931472, %v279_v15 }
  0x48   :  { %v130_v20 = vmul.f32 -2.0, %v124_v16  ;;  %v128_v21 = vmul.f32 0.6931472, %v281_v17 }
  0x49   :  { %282 = vrsqrt.f32 %v129_v18  ;;  %v131_v22 = vmul.f32 -2.0, %v126_v19  ;;  %vm135_vm0 = vcmp.eq.f32.partialorder %v129_v18, inf  ;;  %v138_v25 = vand.u32 2147483648, %v129_v18 }
  0x4a   :  { %284 = vrsqrt.f32 %v130_v20  ;;  %v132_v23 = vmul.f32 -2.0, %v128_v21  ;;  %vm137_vm1 = vcmp.eq.f32.partialorder %v129_v18, 0.0  ;;  %vm142_vm2 = vcmp.eq.f32.partialorder %v130_v20, inf }
  0x4b   :  { %286 = vrsqrt.f32 %v131_v22  ;;  %v145_v28 = vand.u32 2147483648, %v130_v20  ;;  %vm144_vm3 = vcmp.eq.f32.partialorder %v130_v20, 0.0  ;;  %vm149_vm4 = vcmp.eq.f32.partialorder %v131_v22, inf }
  0x4c   :  { %288 = vrsqrt.f32 %v132_v23  ;;  %vm151_vm5 = vcmp.eq.f32.partialorder %v131_v22, 0.0  ;;  %v152_v34 = vand.u32 2147483648, %v131_v22  ;;  %vm156_vm6 = vcmp.eq.f32.partialorder %v132_v23, inf }
  0x4d   :  { %v159_v41 = vand.u32 2147483648, %v132_v23  ;;  %vm158_vm7 = vcmp.eq.f32.partialorder %v132_v23, 0.0 }
  0x53   :  { %v283_v24 = vpop.eup %282 }
  0x54   :  { %v285_v26 = vpop.eup %284  ;;  %v134_v27 = vmul.f32 %v283_v24, %v129_v18 }
  0x55   :  { %v141_v29 = vmul.f32 %v285_v26, %v130_v20  ;;  %v287_v31 = vpop.eup %286 }
  0x56   :  { %v136_v30 = vsel %vm135_vm0, %v129_v18, %v134_v27  ;;  %v289_v35 = vpop.eup %288  ;;  %v148_v38 = vmul.f32 %v287_v31, %v131_v22 }
  0x57   :  { %v139_v32 = vsel %vm137_vm1, %v138_v25, %v136_v30  ;;  %v143_v33 = vsel %vm142_vm2, %v130_v20, %v141_v29  ;;  %v155_v40 = vmul.f32 %v289_v35, %v132_v23 }
  0x58   :  { %v177_v36 = vmul.f32 0.001308, %v139_v32  ;;  %v146_v37 = vsel %vm144_vm3, %v145_v28, %v143_v33  ;;  %v150_v43 = vsel %vm149_vm4, %v131_v22, %v148_v38  ;;  %v161_v51 = vmul.f32 0.010328, %v139_v32 }
  0x59   :  { %v178_v39 = vmul.f32 0.001308, %v146_v37  ;;  %v153_v45 = vsel %vm151_vm5, %v152_v34, %v150_v43  ;;  %v157_v46 = vsel %vm156_vm6, %v132_v23, %v155_v40  ;;  %v162_v56 = vmul.f32 0.010328, %v146_v37  ;;  %v226_v40 = vld [vmem:[#allocation4 + $0x8] sm:$0xff] }
  0x5a   :  { %v181_v42 = vadd.f32 0.189269, %v177_v36  ;;  %v179_v48 = vmul.f32 0.001308, %v153_v45  ;;  %v394_v50 = vsel %vm158_vm7, %v159_v41, %v157_v46  ;;  %v165_v60 = vadd.f32 0.802853, %v161_v51 }
  0x5b   :  { %v182_v44 = vadd.f32 0.189269, %v178_v39  ;;  %v180_v57 = vmul.f32 0.001308, %v394_v50  ;;  %v166_v5 = vadd.f32 0.802853, %v162_v56 }
  0x5c   :  { %v185_v47 = vmul.f32 %v181_v42, %v139_v32  ;;  %v183_v54 = vadd.f32 0.189269, %v179_v48  ;;  %v163_v6 = vmul.f32 0.010328, %v153_v45  ;;  %v169_v9 = vmul.f32 %v165_v60, %v139_v32  ;;  %v225_v36 = vld [vmem:[#allocation4] sm:$0xff] }
  0x5d   :  { %v186_v49 = vmul.f32 %v182_v44, %v146_v37  ;;  %v184_v4 = vadd.f32 0.189269, %v180_v57  ;;  %v170_v12 = vmul.f32 %v166_v5, %v146_v37  ;;  %v164_v14 = vmul.f32 0.010328, %v394_v50 }
  0x5e   :  { %v189_v52 = vadd.f32 1.432788, %v185_v47  ;;  %v187_v59 = vmul.f32 %v183_v54, %v153_v45  ;;  %v167_v13 = vadd.f32 0.802853, %v163_v6  ;;  %v173_v16 = vadd.f32 2.515517, %v169_v9 }
  0x5f   :  { %v190_v53 = vadd.f32 1.432788, %v186_v49  ;;  %v188_v8 = vmul.f32 %v184_v4, %v394_v50  ;;  %v174_v18 = vadd.f32 2.515517, %v170_v12  ;;  %v168_v20 = vadd.f32 0.802853, %v164_v14 }
  0x60   :  { %v193_v55 = vmul.f32 %v189_v52, %v139_v32  ;;  %v191_v63 = vadd.f32 1.432788, %v187_v59  ;;  %v171_v19 = vmul.f32 %v167_v13, %v153_v45  ;;  %v228_v52 = vld [vmem:[#allocation4 + $0x18] sm:$0xff] }
  0x61   :  { %v194_v58 = vmul.f32 %v190_v53, %v146_v37  ;;  %v192_v11 = vadd.f32 1.432788, %v188_v8  ;;  %v172_v26 = vmul.f32 %v168_v20, %v394_v50 }
  0x62   :  { %v197_v61 = vadd.f32 1.0, %v193_v55  ;;  %v195_v7 = vmul.f32 %v191_v63, %v153_v45  ;;  %v175_v25 = vadd.f32 2.515517, %v171_v19 }
  0x63   :  { %v198_v62 = vadd.f32 1.0, %v194_v58  ;;  %v196_v15 = vmul.f32 %v192_v11, %v394_v50  ;;  %v176_v34 = vadd.f32 2.515517, %v172_v26 }
  0x64   :  { %290 = vrcp.f32 %v197_v61  ;;  %v199_v10 = vadd.f32 1.0, %v195_v7 }
  0x65   :  { %292 = vrcp.f32 %v198_v62  ;;  %v200_v17 = vadd.f32 1.0, %v196_v15 }
  0x66   :  { %294 = vrcp.f32 %v199_v10 }
  0x67   :  { %296 = vrcp.f32 %v200_v17 }
  0x6e   :  { %v291_v21 = vpop.eup %290 }
  0x6f   :  { %v293_v22 = vpop.eup %292  ;;  %v202_v23 = vmul.f32 %v291_v21, %v173_v16 }
  0x70   :  { %v204_v24 = vmul.f32 %v293_v22, %v174_v18  ;;  %v295_v29 = vpop.eup %294 }
  0x71   :  { %v209_v27 = vsub.f32 %v139_v32, %v202_v23  ;;  %v206_v33 = vmul.f32 %v295_v29, %v175_v25  ;;  %v297_v42 = vpop.eup %296 }
  0x72   :  { %v210_v28 = vsub.f32 %v146_v37, %v204_v24  ;;  %v208_v37 = vmul.f32 %v297_v42, %v176_v34 }
  0x73   :  { %v217_v30 = vsub.f32 0.0, %v209_v27  ;;  %v211_v41 = vsub.f32 %v153_v45, %v206_v33 }
  0x74   :  { %v218_v31 = vsub.f32 0.0, %v210_v28  ;;  %v212_v47 = vsub.f32 %v394_v50, %v208_v37 }
  0x75   :  { %v221_v35 = vsel %vm213_vm8, %v217_v30, %v209_v27  ;;  %v219_v0 = vsub.f32 0.0, %v211_v41 }
  0x76   :  { %v229_v38 = vmul.f32 0.1, %v221_v35  ;;  %v222_v39 = vsel %vm214_vm9, %v218_v31, %v210_v28  ;;  %v220_v49 = vsub.f32 0.0, %v212_v47 }
  0x77   :  { %v230_v43 = vmul.f32 0.1, %v222_v39  ;;  %v223_v46 = vsel %vm215_vm10, %v219_v0, %v211_v41 }
  0x78   :  { %v233_v32 = vadd.f32 %v229_v38, %v225_v36  ;;  %v231_v48 = vmul.f32 0.1, %v223_v46  ;;  %v224_v45 = vsel %vm216_vm11, %v220_v49, %v212_v47 }
  0x79   :  { %v234_v44 = vadd.f32 %v230_v43, %v226_v40  ;;  %v232_v2 = vmul.f32 0.1, %v224_v45 }
  0x7a   :  { %237 = vst [vmem:[#allocation7] sm:$0xff] %v233_v32  ;;  %v235_v51 = vadd.f32 %v231_v48, %v227_v1 }
  0x7b   :  { %238 = vst [vmem:[#allocation7 + $0x8] sm:$0xff] %v234_v44  ;;  %v236_v53 = vadd.f32 %v232_v2, %v228_v52 }
  0x7c   :  { %239 = vst [vmem:[#allocation7 + $0x10] sm:$0xff] %v235_v51 }
  0x7d   :  { %240 = vst [vmem:[#allocation7 + $0x18] sm:$0xff] %v236_v53 }
  0x7e   :  { %331 = shalt.err (!%p328_p12)
}
  0x7f   :  { %s332_s27 = scalar_lea.hbm %s420_s2, 512 }
  0x80   :  { %p333_p13 = scmp.ne.s32.totalorder %s420_s2, %s332_s27  ;;  %p336_p0 = scmp.lt.u32.totalorder %s332_s27, %s420_s2 }
  0x82   :  { %p338_p1 = pnand %p336_p0, %p333_p13 }
  0x84   :  { %341 = shalt.err (!%p338_p1)
}
  0x85   :  { %250 = dma.vmem_to_hbm [thread:$0]  %s248_s1, 512, %s420_s2, [#allocation6]  }
  0x86   :  { %344 = dma.done.wait [#allocation6], 512  }
  0x87   :  { %345 = vsyncadd [#allocation6], 4294966784 }
  0x88   :  { %254 = vsyncpa [#allocation5], 1 }
  0x89   :  { %255 = vsyncpa [#allocation6], 1 }

</bundles_post_ra>
